<compile_context>
chip_gen: v6e
topology: v6e:2x2x1
jax: 0.10.0
libtpu: 0.0.40
codegen_flags: <defaults>
</compile_context>

<pallas_src>
import jax
import jax.numpy as jnp
import numpy as np
from jax.experimental import pallas as pl
from jax.experimental.pallas import tpu as pltpu


def lstm_cell_kernel(x_ref, h_ref, c_ref, wx_ref, wh_ref, b_ref,
                     h_out_ref, c_out_ref):
    """One LSTMCell step for a (TB,) batch tile.

    Gate weight columns are pre-packed as [i | f | o | g]; Wx/Wh are the split of
    the packed (E+H, 4H) gate weight along the contraction dim, so
        gates = x @ Wx + h @ Wh + b   ==   cat(x, h) @ W + b
    with no in-kernel concat.  MXU operands are bf16, accumulation is f32; all
    elementwise math (sigmoid/tanh/blends, cell state) stays in f32.
    """
    H = h_ref.shape[-1]
    mm_dt = wx_ref.dtype

    gates = (jnp.dot(x_ref[...].astype(mm_dt), wx_ref[...],
                     preferred_element_type=jnp.float32)
             + jnp.dot(h_ref[...].astype(mm_dt), wh_ref[...],
                       preferred_element_type=jnp.float32)
             + b_ref[...])                                    # (TB, 4H) f32

    sig = jax.nn.sigmoid(gates[:, : 3 * H])                   # one EUP pass: i, f, o
    i_gate = sig[:, :H]
    f_gate = sig[:, H:2 * H]
    o_gate = sig[:, 2 * H:3 * H]
    g_gate = jnp.tanh(gates[:, 3 * H:])                       # one EUP pass: g

    c_new = f_gate * c_ref[...] + i_gate * g_gate
    h_new = o_gate * jnp.tanh(c_new)

    # dropout is identity in eval-mode / deterministic forward
    h_out_ref[...] = h_new.astype(h_out_ref.dtype)
    c_out_ref[...] = c_new.astype(c_out_ref.dtype)


def pack_gate_params(w_torch, b_torch, input_size):
    """torch nn.Linear(E+H, 4H): weight (4H, E+H) with row blocks [i; f; g; o],
    bias (4H,).  Returns (Wx (E,4H), Wh (H,4H), b (1,4H)) with gate columns
    re-ordered to [i | f | o | g]."""
    four_h = w_torch.shape[0]
    H = four_h // 4
    perm = jnp.concatenate([
        jnp.arange(0, H),            # i
        jnp.arange(H, 2 * H),        # f
        jnp.arange(3 * H, 4 * H),    # o
        jnp.arange(2 * H, 3 * H),    # g
    ])
    w_packed = jnp.transpose(w_torch)[:, perm]                # (E+H, 4H)
    wx = w_packed[:input_size]                                # (E, 4H)
    wh = w_packed[input_size:]                                # (H, 4H)
    b_packed = b_torch[perm].reshape(1, four_h)               # (1, 4H)
    return wx, wh, b_packed


def lstm_cell_forward(x, w_torch, b_torch, hx=None, *, tile_b=None,
                      mm_dtype=jnp.bfloat16):
    """Pallas LSTMCell forward.  x: (B, E).  Returns (hidden, cell), each (B, H) f32."""
    B, E = x.shape
    H = w_torch.shape[0] // 4
    assert w_torch.shape[1] == E + H

    if hx is None:                                            # torch default: zeros
        h0 = jnp.zeros((B, H), jnp.float32)
        c0 = jnp.zeros((B, H), jnp.float32)
    else:
        h0, c0 = hx
        h0 = h0.astype(jnp.float32)
        c0 = c0.astype(jnp.float32)

    wx, wh, b_packed = pack_gate_params(w_torch.astype(jnp.float32),
                                        b_torch.astype(jnp.float32), E)
    wx = wx.astype(mm_dtype)                                  # one-time weight cast
    wh = wh.astype(mm_dtype)

    # 2 parallel batch tiles by default: uses both TensorCores on v7x,
    # negligible extra grid-step cost on single-TC v5e/v6e.
    if tile_b is None:
        tile_b = B // 2 if (B % 16 == 0) else B
    assert B % tile_b == 0 and tile_b % 8 == 0, \
        "tile_b must divide B and be a multiple of 8"

    x_f32 = x.astype(jnp.float32)                             # no wrapper bf16 copy

    def batch_spec(last):
        return pl.BlockSpec((tile_b, last), lambda i: (i, 0))

    def full_spec(arr):                                       # constant index_map:
        return pl.BlockSpec(arr.shape, lambda i: (0,) * arr.ndim)  # fetched once

    grid_spec = pltpu.PrefetchScalarGridSpec(
        num_scalar_prefetch=0,
        grid=(B // tile_b,),
        in_specs=[batch_spec(E),           # x tile (f32, cast in-kernel)
                  batch_spec(H),           # h tile (f32, cast in-kernel)
                  batch_spec(H),           # c tile (f32)
                  full_spec(wx),           # packed gate weight, x part (E, 4H)
                  full_spec(wh),           # packed gate weight, h part (H, 4H)
                  full_spec(b_packed)],    # packed gate bias (1, 4H)
        out_specs=[batch_spec(H), batch_spec(H)],
    )

    h_new, c_new = pl.pallas_call(
        lstm_cell_kernel,
        out_shape=(jax.ShapeDtypeStruct((B, H), jnp.float32),
                   jax.ShapeDtypeStruct((B, H), jnp.float32)),
        grid_spec=grid_spec,
        compiler_params=pltpu.CompilerParams(dimension_semantics=("parallel",)),
    )(x_f32, h0, c0, wx, wh, b_packed)

    return h_new, c_new


def lstm_cell_ref(x, w_torch, b_torch, hx=None):
    """Pure-JAX reference mirroring torch LSTMCell.forward (eval-mode dropout)."""
    B = x.shape[0]
    H = w_torch.shape[0] // 4
    if hx is None:
        hx = (jnp.zeros((B, H), jnp.float32), jnp.zeros((B, H), jnp.float32))
    h, c = hx
    combined = jnp.concatenate([x, h], axis=1)
    gates = combined @ w_torch.T + b_torch
    i_gate, f_gate, g_gate, o_gate = jnp.split(gates, 4, axis=1)
    f_gate = jax.nn.sigmoid(f_gate)
    i_gate = jax.nn.sigmoid(i_gate)
    g_gate = jnp.tanh(g_gate)
    o_gate = jax.nn.sigmoid(o_gate)
    c_new = f_gate * c + i_gate * g_gate
    h_new = o_gate * jnp.tanh(c_new)
    return h_new, c_new


if __name__ == "__main__":
    # SMALL shapes consistent with the module (module default batch is 1024)
    B, E, H = 128, 32, 32

    key = jax.random.PRNGKey(0)
    kx, kh, kc, kw, kb = jax.random.split(key, 5)
    x = 0.5 * jax.random.normal(kx, (B, E), jnp.float32)
    h0 = 0.5 * jax.random.normal(kh, (B, H), jnp.float32)
    c0 = 0.5 * jax.random.normal(kc, (B, H), jnp.float32)
    bound = 1.0 / np.sqrt(E + H)
    w = jax.random.uniform(kw, (4 * H, E + H), jnp.float32, -bound, bound)  # torch layout
    b = jax.random.uniform(kb, (4 * H,), jnp.float32, -bound, bound)

    # --- hx provided ---
    h_new, c_new = lstm_cell_forward(x, w, b, hx=(h0, c0), tile_b=B // 2)
    h_new, c_new = jax.block_until_ready((h_new, c_new))
    h_ref, c_ref = lstm_cell_ref(x, w, b, hx=(h0, c0))
    # bf16 matmul operands -> relaxed tolerance (f32 accumulation + f32 elementwise)
    np.testing.assert_allclose(np.asarray(h_new), np.asarray(h_ref), rtol=2e-2, atol=2e-2)
    np.testing.assert_allclose(np.asarray(c_new), np.asarray(c_ref), rtol=2e-2, atol=2e-2)

    # --- hx=None (default zero-state branch of the torch module) ---
    h_new0, c_new0 = lstm_cell_forward(x, w, b, hx=None, tile_b=B // 2)
    h_new0, c_new0 = jax.block_until_ready((h_new0, c_new0))
    h_ref0, c_ref0 = lstm_cell_ref(x, w, b, hx=None)
    np.testing.assert_allclose(np.asarray(h_new0), np.asarray(h_ref0), rtol=2e-2, atol=2e-2)
    np.testing.assert_allclose(np.asarray(c_new0), np.asarray(c_ref0), rtol=2e-2, atol=2e-2)

    print("KERNEL_OK")
</pallas_src>

<mosaic_0001>
module attributes {stable_mosaic.version = 11 : i64} {
  func.func @lstm_cell_kernel(%arg0: i32, %arg1: memref<64x32xf32, #tpu.memory_space<vmem>>, %arg2: memref<64x32xf32, #tpu.memory_space<vmem>>, %arg3: memref<64x32xf32, #tpu.memory_space<vmem>>, %arg4: memref<32x128xbf16, #tpu.memory_space<vmem>>, %arg5: memref<32x128xbf16, #tpu.memory_space<vmem>>, %arg6: memref<1x128xf32, #tpu.memory_space<vmem>>, %arg7: memref<64x32xf32, #tpu.memory_space<vmem>>, %arg8: memref<64x32xf32, #tpu.memory_space<vmem>>) attributes {dimension_semantics = [#tpu.dimension_semantics<parallel>], iteration_bounds = array<i64: 2>, scalar_prefetch = 0 : i64, scratch_operands = 0 : i64, tpu.core_type = #tpu.core_type<tc>, window_params = [{transform_indices = @transform_0, window_bounds = array<i64: 64, 32>}, {transform_indices = @transform_1, window_bounds = array<i64: 64, 32>}, {transform_indices = @transform_2, window_bounds = array<i64: 64, 32>}, {pipeline_mode = #tpu.pipeline_mode<synchronous>, transform_indices = @transform_3, window_bounds = array<i64: 32, 128>}, {pipeline_mode = #tpu.pipeline_mode<synchronous>, transform_indices = @transform_4, window_bounds = array<i64: 32, 128>}, {pipeline_mode = #tpu.pipeline_mode<synchronous>, transform_indices = @transform_5, window_bounds = array<i64: 1, 128>}, {transform_indices = @transform_6, window_bounds = array<i64: 64, 32>}, {transform_indices = @transform_7, window_bounds = array<i64: 64, 32>}]} {
    %c0 = arith.constant 0 : index
    %c0_0 = arith.constant 0 : index
    %0 = vector.load %arg1[%c0, %c0_0] : memref<64x32xf32, #tpu.memory_space<vmem>>, vector<64x32xf32>
    %1 = arith.truncf %0 : vector<64x32xf32> to vector<64x32xbf16>
    %c0_1 = arith.constant 0 : index
    %c0_2 = arith.constant 0 : index
    %2 = vector.load %arg4[%c0_1, %c0_2] : memref<32x128xbf16, #tpu.memory_space<vmem>>, vector<32x128xbf16>
    %cst = arith.constant dense<0.000000e+00> : vector<64x128xf32>
    %3 = tpu.matmul %1, %2, %cst {dimension_numbers = #tpu.dot_dimension_numbers<[1], [0], [0], [1], [0, 0, 1, 1], [], []>} : vector<64x32xbf16>, vector<32x128xbf16>, vector<64x128xf32> -> vector<64x128xf32>
    %c0_3 = arith.constant 0 : index
    %c0_4 = arith.constant 0 : index
    %4 = vector.load %arg2[%c0_3, %c0_4] : memref<64x32xf32, #tpu.memory_space<vmem>>, vector<64x32xf32>
    %5 = arith.truncf %4 : vector<64x32xf32> to vector<64x32xbf16>
    %c0_5 = arith.constant 0 : index
    %c0_6 = arith.constant 0 : index
    %6 = vector.load %arg5[%c0_5, %c0_6] : memref<32x128xbf16, #tpu.memory_space<vmem>>, vector<32x128xbf16>
    %cst_7 = arith.constant dense<0.000000e+00> : vector<64x128xf32>
    %7 = tpu.matmul %5, %6, %cst_7 {dimension_numbers = #tpu.dot_dimension_numbers<[1], [0], [0], [1], [0, 0, 1, 1], [], []>} : vector<64x32xbf16>, vector<32x128xbf16>, vector<64x128xf32> -> vector<64x128xf32>
    %8 = arith.addf %3, %7 : vector<64x128xf32>
    %c0_8 = arith.constant 0 : index
    %c0_9 = arith.constant 0 : index
    %9 = vector.load %arg6[%c0_8, %c0_9] : memref<1x128xf32, #tpu.memory_space<vmem>>, vector<1x128xf32>
    %10 = vector.broadcast %9 : vector<1x128xf32> to vector<64x128xf32>
    %11 = arith.addf %8, %10 : vector<64x128xf32>
    %12 = vector.extract_strided_slice %11 {offsets = [0, 0], sizes = [64, 96], strides = [1, 1]} : vector<64x128xf32> to vector<64x96xf32>
    %13 = arith.negf %12 : vector<64x96xf32>
    %14 = math.exp %13 : vector<64x96xf32>
    %cst_10 = arith.constant 1.000000e+00 : f32
    %15 = vector.broadcast %cst_10 : f32 to vector<64x96xf32>
    %16 = arith.addf %15, %14 : vector<64x96xf32>
    %17 = arith.divf %15, %16 : vector<64x96xf32>
    %18 = vector.extract_strided_slice %17 {offsets = [0, 0], sizes = [64, 32], strides = [1, 1]} : vector<64x96xf32> to vector<64x32xf32>
    %19 = vector.extract_strided_slice %17 {offsets = [0, 32], sizes = [64, 32], strides = [1, 1]} : vector<64x96xf32> to vector<64x32xf32>
    %20 = vector.extract_strided_slice %17 {offsets = [0, 64], sizes = [64, 32], strides = [1, 1]} : vector<64x96xf32> to vector<64x32xf32>
    %21 = vector.extract_strided_slice %11 {offsets = [0, 96], sizes = [64, 32], strides = [1, 1]} : vector<64x128xf32> to vector<64x32xf32>
    %22 = math.tanh %21 : vector<64x32xf32>
    %c0_11 = arith.constant 0 : index
    %c0_12 = arith.constant 0 : index
    %23 = vector.load %arg3[%c0_11, %c0_12] : memref<64x32xf32, #tpu.memory_space<vmem>>, vector<64x32xf32>
    %24 = arith.mulf %19, %23 : vector<64x32xf32>
    %25 = arith.mulf %18, %22 : vector<64x32xf32>
    %26 = arith.addf %24, %25 : vector<64x32xf32>
    %27 = math.tanh %26 : vector<64x32xf32>
    %28 = arith.mulf %20, %27 : vector<64x32xf32>
    %c0_13 = arith.constant 0 : index
    %c0_14 = arith.constant 0 : index
    %29 = vector.load %arg7[%c0_13, %c0_14] : memref<64x32xf32, #tpu.memory_space<vmem>>, vector<64x32xf32>
    tpu.vector_store %arg7[%c0_13, %c0_14], %28 {strides = array<i32>} : memref<64x32xf32, #tpu.memory_space<vmem>>, vector<64x32xf32>,
    %c0_15 = arith.constant 0 : index
    %c0_16 = arith.constant 0 : index
    %30 = vector.load %arg8[%c0_15, %c0_16] : memref<64x32xf32, #tpu.memory_space<vmem>>, vector<64x32xf32>
    tpu.vector_store %arg8[%c0_15, %c0_16], %26 {strides = array<i32>} : memref<64x32xf32, #tpu.memory_space<vmem>>, vector<64x32xf32>,
    return
  }
  func.func @transform_0(%arg0: i32) -> (i32, i32) {
    %c0_i32 = arith.constant 0 : i32
    %c0_i32_0 = arith.constant 0 : i32
    return %arg0, %c0_i32 : i32, i32
  }
  func.func @transform_1(%arg0: i32) -> (i32, i32) {
    %c0_i32 = arith.constant 0 : i32
    %c0_i32_0 = arith.constant 0 : i32
    return %arg0, %c0_i32 : i32, i32
  }
  func.func @transform_2(%arg0: i32) -> (i32, i32) {
    %c0_i32 = arith.constant 0 : i32
    %c0_i32_0 = arith.constant 0 : i32
    return %arg0, %c0_i32 : i32, i32
  }
  func.func @transform_3(%arg0: i32) -> (i32, i32) {
    %c0_i32 = arith.constant 0 : i32
    %c0_i32_0 = arith.constant 0 : i32
    %c0_i32_1 = arith.constant 0 : i32
    return %c0_i32, %c0_i32_0 : i32, i32
  }
  func.func @transform_4(%arg0: i32) -> (i32, i32) {
    %c0_i32 = arith.constant 0 : i32
    %c0_i32_0 = arith.constant 0 : i32
    %c0_i32_1 = arith.constant 0 : i32
    return %c0_i32, %c0_i32_0 : i32, i32
  }
  func.func @transform_5(%arg0: i32) -> (i32, i32) {
    %c0_i32 = arith.constant 0 : i32
    %c0_i32_0 = arith.constant 0 : i32
    %c0_i32_1 = arith.constant 0 : i32
    return %c0_i32, %c0_i32_0 : i32, i32
  }
  func.func @transform_6(%arg0: i32) -> (i32, i32) {
    %c0_i32 = arith.constant 0 : i32
    %c0_i32_0 = arith.constant 0 : i32
    return %arg0, %c0_i32 : i32, i32
  }
  func.func @transform_7(%arg0: i32) -> (i32, i32) {
    %c0_i32 = arith.constant 0 : i32
    %c0_i32_0 = arith.constant 0 : i32
    return %arg0, %c0_i32 : i32, i32
  }
}

</mosaic_0001>

<bundles_post_ra>
// kernel: tpu_custom_call.1
= control target key start
LH: loop header
LB: loop body
LE: loop exit
PB: predicated region body
PF: predicated region fallthrough
CT: control target
= control target key end

     0   :  { %s1197_s24 = smov 0   ;;  %s1377_s0 = inlined_call_operand.vmem [shape: f32[128,32], index: 0, kind: input, shape index: {}]   ;;  %s1378_s1 = inlined_call_operand.vmem [shape: f32[128,32], index: 1, kind: input, shape index: {}]   ;;  %s1379_s2 = inlined_call_operand.vmem [shape: f32[128,32], index: 2, kind: input, shape index: {}]   ;;  %s1380_s3 = inlined_call_operand.vmem [shape: bf16[32,128], index: 3, kind: input, shape index: {}]   ;;  %s1381_s4 = inlined_call_operand.vmem [shape: bf16[32,128], index: 4, kind: input, shape index: {}]   ;;  %s1382_s5 = inlined_call_operand.vmem [shape: f32[1,128], index: 5, kind: input, shape index: {}]   ;;  %s1383_s6 = inlined_call_operand.vmem [shape: f32[128,32], index: 6, kind: output, shape index: {0}]   ;;  %s1384_s7 = inlined_call_operand.vmem [shape: f32[128,32], index: 7, kind: output, shape index: {1}]  }
   0x1 LB: > { %s993_s25 = sadd.s32 4294967295, %s1152_s24   ;;  %p997_p0 = scmp.ge.s32.totalorder %s1152_s24, 1  ;;  %s1152_s24 = sphi %s1197_s24, %s18_s24  }
   0x2   : > { %p263_p1 = scmp.lt.s32.totalorder %s1152_s24, 3 }
   0x4   : > { %p264_p2 = pnand %p997_p0, %p263_p1 }
   0x5   : > { %s998_s28 = sshll.u32 (!%p264_p2), %s993_s25, 3  ;;  %s1154_s21 = smov (!%p264_p2), 32  }
   0x6   : > { %267 = sbr.rel (%p264_p2) target bundleno = 739 (0x2e3), region = 44  ;;  %p311_p3 = scmp.lt.s32.totalorder (!%p264_p2), %s998_s28, 15 }
   0x7   : > { %s1155_s26 = smov (!%p264_p2), 96   ;;  %s1156_s27 = smov (!%p264_p2), 64  }
   0xb   : > { %v1078_v0 = vld [vmem:[%s1381_s4 + $0x8] sm:$0xff]   ;;  %v1080_v2 = vld [vmem:[%s1381_s4] sm:$0xff]   ;;  %s1386_s28 = smov (!%p311_p3, %s998_s28), 15  ;;  %vm385_vm0 = vcmask 261120  }
   0xc   : > { %v1079_v1 = vld [vmem:[%s1380_s3 + $0x8] sm:$0xff]   ;;  %1043 = vmatprep.subr.bf16.mxu0 %v1078_v0  ;;  %v1081_v3 = vld [vmem:[%s1380_s3] sm:$0xff]   ;;  %s1217_s12 = sshll.u32 %s1386_s28, 3 }
   0xd   : > { %1055 = vmatprep.subr.bf16.mxu1 %v1079_v1  ;;  %1044 = vmatpush3.bf16.msra.mxu0 %v1078_v0  ;;  %s320_s15 = scalar_lea.vmem %s1378_s1, %s1217_s12  ;;  %s1227_s18 = scalar_lea.vmem %s1377_s0, %s1217_s12  ;;  %v1020_v30 = vld [vmem:[%s1382_s5] ss:$0 sm:$0xff] }
   0xe   : > { %1056 = vmatpush3.bf16.msra.mxu1 %v1079_v1  ;;  %1045 = vmatprep.subr.bf16.mxu0 %v1080_v2  ;;  %v357_v4 = vld [vmem:[%s320_s15] sm:$0xff]  ;;  %v358_v5 = vld [vmem:[%s320_s15 + $0x8] sm:$0xff]  ;;  %v359_v9 = vld [vmem:[%s320_s15 + $0x10] sm:$0xff]  ;;  %s326_s25 = scalar_lea.vmem %s1379_s2, %s1217_s12  ;;  %s1339_s30 = scalar_lea.vmem %s1384_s7, %s1217_s12 }
   0xf   : > { %1057 = vmatprep.subr.bf16.mxu1 %v1081_v3  ;;  %v341_v6 = vld [vmem:[%s1227_s18] sm:$0xff]  ;;  %v365_v7 = vpack.c.bf16 %v358_v5, %v357_v4  ;;  %v342_v8 = vld [vmem:[%s1227_s18 + $0x8] sm:$0xff]  ;;  %v360_v10 = vld [vmem:[%s320_s15 + $0x18] sm:$0xff]  ;;  %s332_s10 = scalar_lea.vmem %s1383_s6, %s1217_s12 }
  0x10   : > { %v349_v11 = vpack.c.bf16 %v342_v8, %v341_v6  ;;  %v366_v12 = vpack.c.bf16 %v360_v10, %v359_v9  ;;  %v343_v13 = vld [vmem:[%s1227_s18 + $0x10] sm:$0xff]  ;;  %v344_v14 = vld [vmem:[%s1227_s18 + $0x18] sm:$0xff]  ;;  %v361_v15 = vld [vmem:[%s320_s15 + $0x20] sm:$0xff] }
  0x11   : > { %1046 = vmatpush3.bf16.msra.mxu0 %v1080_v2  ;;  %1047 = vmatprep.mubr.msk.bf16.mxu0 %vm385_vm0, %v365_v7  ;;  %v350_v16 = vpack.c.bf16 %v344_v14, %v343_v13  ;;  %v362_v17 = vld [vmem:[%s320_s15 + $0x28] sm:$0xff]  ;;  %v345_v18 = vld [vmem:[%s1227_s18 + $0x20] sm:$0xff]  ;;  %v363_v22 = vld [vmem:[%s320_s15 + $0x30] sm:$0xff] }
  0x12   : > { %1058 = vmatpush3.bf16.msra.mxu1 %v1081_v3  ;;  %v346_v19 = vld [vmem:[%s1227_s18 + $0x28] sm:$0xff]  ;;  %1059 = vmatprep.mubr.msk.bf16.mxu1 %vm385_vm0, %v349_v11  ;;  %v367_v20 = vpack.c.bf16 %v362_v17, %v361_v15  ;;  %v364_v23 = vld [vmem:[%s320_s15 + $0x38] sm:$0xff]  ;;  %v347_v24 = vld [vmem:[%s1227_s18 + $0x30] sm:$0xff] }
  0x13   : > { %v351_v21 = vpack.c.bf16 %v346_v19, %v345_v18  ;;  %v348_v25 = vld [vmem:[%s1227_s18 + $0x38] sm:$0xff]  ;;  %v368_v26 = vpack.c.bf16 %v364_v23, %v363_v22  ;;  %v623_v4 = vld [vmem:[%s326_s25] sm:$0xff]  ;;  %v624_v6 = vld [vmem:[%s326_s25 + $0x8] sm:$0xff] }
  0x14   : > { %1048 = vmatmul.mubr.msk.bf16.vlgmr.msra.gmra.mxu0 %vm385_vm0, %v366_v12  ;;  %v352_v27 = vpack.c.bf16 %v348_v25, %v347_v24  ;;  %v625_v7 = vld [vmem:[%s326_s25 + $0x10] sm:$0xff]  ;;  %v626_v8 = vld [vmem:[%s326_s25 + $0x18] sm:$0xff]  ;;  %v627_v9 = vld [vmem:[%s326_s25 + $0x20] sm:$0xff] }
  0x15   : > { %1060 = vmatmul.mubr.msk.bf16.vlgmr.msra.gmra.mxu1 %vm385_vm0, %v350_v16  ;;  %1051 = vmatprep.mubr.msk.bf16.mxu0 %vm385_vm0, %v367_v20  ;;  %v628_v10 = vld [vmem:[%s326_s25 + $0x28] sm:$0xff]  ;;  %v629_v11 = vld [vmem:[%s326_s25 + $0x30] sm:$0xff]  ;;  %v630_v12 = vld [vmem:[%s326_s25 + $0x38] sm:$0xff] }
  0x16   : > { %1063 = vmatprep.mubr.msk.bf16.mxu1 %vm385_vm0, %v351_v21 }
  0x1c   : > { %1052 = vmatmul.mubr.msk.bf16.gmra.mxu0 %vm385_vm0, %v368_v26 }
  0x1d   : > { %1064 = vmatmul.mubr.msk.bf16.gmra.mxu1 %vm385_vm0, %v352_v27 }
  0xd4   : > { %v1049_v28 = vpop.f32.mrf.mxu0 }
  0xd5   : > { %v1061_v29 = vpop.f32.mrf.mxu1 }
  0xd6   : > { %v530_v31 = vadd.f32 %v1061_v29, %v1049_v28  ;;  %v432_v32 = vpop.f32.mrf.mxu0 }
  0xd7   : > { %v521_v33 = vpop.f32.mrf.mxu1 }
  0xd8   : > { %v1248_v34 = vadd.f32 %v1020_v30, %v530_v31  ;;  %v522_v35 = vadd.f32 %v521_v33, %v432_v32  ;;  %v1050_v36 = vpop.f32.mrf.mxu0 }
  0xd9   : > { %v1062_v37 = vpop.f32.mrf.mxu1 }
  0xda   : > { %1082 = vtanh.f32 %v1248_v34  ;;  %v1251_v38 = vadd.f32 %v1020_v30, %v522_v35  ;;  %v533_v39 = vadd.f32 %v1062_v37, %v1050_v36  ;;  %v435_v40 = vpop.f32.mrf.mxu0  ;;  %v1023_v13 = vmul.f32 -1.442695, %v1248_v34 }
  0xdb   : > { %v524_v41 = vpop.f32.mrf.mxu1 }
  0xdc   : > { %v562_v42 = vadd.f32 %v1020_v30, %v533_v39  ;;  %v525_v43 = vadd.f32 %v524_v41, %v435_v40  ;;  %v1053_v44 = vpop.f32.mrf.mxu0  ;;  %1084 = vtanh.f32 %v1251_v38  ;;  %v1021_v14 = vmul.f32 -1.442695, %v1251_v38 }
  0xdd   : > { %v1065_v45 = vpop.f32.mrf.mxu1 }
  0xde   : > { %v560_v46 = vadd.f32 %v1020_v30, %v525_v43  ;;  %v448_v47 = vpop.f32.mrf.mxu0  ;;  %1086 = vtanh.f32 %v562_v42  ;;  %v546_v49 = vadd.f32 %v1065_v45, %v1053_v44  ;;  %v1024_v15 = vmul.f32 -1.442695, %v562_v42 }
  0xdf   : > { %v537_v48 = vpop.f32.mrf.mxu1 }
  0xe0   : > { %v538_v50 = vadd.f32 %v537_v48, %v448_v47  ;;  %v1054_v51 = vpop.f32.mrf.mxu0  ;;  %1088 = vtanh.f32 %v560_v46  ;;  %v565_v56 = vadd.f32 %v1020_v30, %v546_v49  ;;  %v1022_v16 = vmul.f32 -1.442695, %v560_v46 }
  0xe1   : > { %v1066_v52 = vpop.f32.mrf.mxu1 }
  0xe2   : > { %v563_v53 = vadd.f32 %v1020_v30, %v538_v50  ;;  %v451_v54 = vpop.f32.mrf.mxu0  ;;  %v549_v58 = vadd.f32 %v1066_v52, %v1054_v51  ;;  %v1027_v18 = vmul.f32 -1.442695, %v565_v56 }
  0xe3   : > { %v540_v55 = vpop.f32.mrf.mxu1 }
  0xe4   : > { %v541_v57 = vadd.f32 %v540_v55, %v451_v54  ;;  %1090 = vtanh.f32 %v563_v53  ;;  %v566_v61 = vadd.f32 %v1020_v30, %v549_v58  ;;  %v1025_v17 = vmul.f32 -1.442695, %v563_v53 }
  0xe5   : > { %1092 = vtanh.f32 %v565_v56 }
  0xe6   : > { %v564_v59 = vadd.f32 %v1020_v30, %v541_v57  ;;  %v1028_v21 = vmul.f32 -1.442695, %v566_v61 }
  0xe7   : > { %v1083_v60 = vpop.eup %1082 }
  0xe8   : > { %683 = vrot.lane.b32.xlu1 %v1083_v60, %s1154_s21  ;;  %1094 = vtanh.f32 %v564_v59  ;;  %v1026_v19 = vmul.f32 -1.442695, %v564_v59 }
  0xe9   : > { %v1085_v62 = vpop.eup %1084  ;;  %1096 = vtanh.f32 %v566_v61 }
  0xea   : > { %679 = vrot.lane.b32.xlu0 %v1085_v62, %s1154_s21  ;;  %1098 = vpow2.f32 %v1023_v13 }
  0xeb   : > { %v1087_v63 = vpop.eup %1086  ;;  %1100 = vpow2.f32 %v1021_v14 }
  0xec   : > { %685 = vrot.lane.b32.xlu1 %v1087_v63, %s1154_s21  ;;  %1102 = vpow2.f32 %v1024_v15 }
  0xed   : > { %v1089_v0 = vpop.eup %1088  ;;  %1104 = vpow2.f32 %v1022_v16 }
  0xee   : > { %681 = vrot.lane.b32.xlu0 %v1089_v0, %s1154_s21  ;;  %1106 = vpow2.f32 %v1025_v17 }
  0xef   : > { %1108 = vpow2.f32 %v1027_v18 }
  0xf0   : > { %1110 = vpow2.f32 %v1026_v19 }
  0xf1   : > { %v1091_v1 = vpop.eup %1090  ;;  %1112 = vpow2.f32 %v1028_v21 }
  0xf2   : > { %687 = vrot.lane.b32.xlu0 %v1091_v1, %s1154_s21  ;;  %v1093_v2 = vpop.eup %1092 }
  0xf5   : > { %v1095_v3 = vpop.eup %1094 }
  0xf6   : > { %689 = vrot.lane.b32.xlu1 %v1095_v3, %s1154_s21  ;;  %691 = vrot.lane.b32.xlu0 %v1093_v2, %s1154_s21  ;;  %v1097_v5 = vpop.eup %1096 }
  0xf7   : > { %v1099_v20 = vpop.eup %1098 }
  0xf8   : > { %v593_v22 = vadd.f32 1.0, %v1099_v20  ;;  %v1101_v23 = vpop.eup %1100 }
  0xf9   : > { %v1103_v24 = vpop.eup %1102  ;;  %v591_v25 = vadd.f32 1.0, %v1101_v23 }
  0xfa   : > { %693 = vrot.lane.b32.xlu1 %v1097_v5, %s1154_s21  ;;  %639 = vrot.lane.b32.xlu0 %v623_v4, %s1154_s21  ;;  %1114 = vrcp.f32 %v593_v22  ;;  %v594_v26 = vadd.f32 1.0, %v1103_v24  ;;  %v1105_v27 = vpop.eup %1104 }
  0xfb   : > { %v1107_v28 = vpop.eup %1106  ;;  %1116 = vrcp.f32 %v591_v25  ;;  %v592_v29 = vadd.f32 1.0, %v1105_v27 }
  0xfc   : > { %1118 = vrcp.f32 %v594_v26  ;;  %v1109_v30 = vpop.eup %1108  ;;  %v595_v31 = vadd.f32 1.0, %v1107_v28 }
  0xfd   : > { %v1111_v32 = vpop.eup %1110  ;;  %1120 = vrcp.f32 %v592_v29  ;;  %v597_v33 = vadd.f32 1.0, %v1109_v30 }
  0xfe   : > { %641 = vrot.lane.b32.xlu1 %v624_v6, %s1154_s21  ;;  %643 = vrot.lane.b32.xlu0 %v625_v7, %s1154_s21  ;;  %1122 = vrcp.f32 %v595_v31  ;;  %v596_v34 = vadd.f32 1.0, %v1111_v32  ;;  %v1113_v35 = vpop.eup %1112 }
  0xff   : > { %1124 = vrcp.f32 %v597_v33  ;;  %v598_v39 = vadd.f32 1.0, %v1113_v35 }
 0x100   : > { %1126 = vrcp.f32 %v596_v34 }
 0x101   : > { %1128 = vrcp.f32 %v598_v39 }
 0x102   : > { %645 = vrot.lane.b32.xlu1 %v626_v8, %s1154_s21  ;;  %647 = vrot.lane.b32.xlu0 %v627_v9, %s1154_s21 }
 0x106   : > { %649 = vrot.lane.b32.xlu1 %v628_v10, %s1154_s21  ;;  %651 = vrot.lane.b32.xlu0 %v629_v11, %s1154_s21 }
 0x107   : > { %v1276_v36 = vpop.eup %1114 }
 0x108   : > { %v1280_v41 = vpop.eup %1116 }
 0x109   : > { %v1282_v42 = vpop.eup %1118 }
 0x10a   : > { %653 = vrot.lane.b32.xlu1 %v630_v12, %s1154_s21  ;;  %v1288_v47 = vpop.eup %1120 }
 0x10b   : > { %v1291_v49 = vpop.eup %1122 }
 0x10c   : > { %v1295_v52 = vpop.eup %1124 }
 0x10d   : > { %v1298_v53 = vpop.eup %1126 }
 0x10e   : > { %v1304_v58 = vpop.eup %1128 }
 0x15a   : > { %v684_v37 = vpop.permute.xlu1 %683 }
 0x15b   : > { %v705_v38 = vmul.f32 %v1276_v36, %v684_v37 }
 0x15c   : > { %v680_v40 = vpop.permute.xlu0 %679 }
 0x15d   : > { %723 = vrot.lane.b32.xlu0 %v705_v38, %s1154_s21  ;;  %v703_v43 = vmul.f32 %v1280_v41, %v680_v40 }
 0x15e   : > { %v686_v44 = vpop.permute.xlu1 %685 }
 0x15f   : > { %v706_v45 = vmul.f32 %v1282_v42, %v686_v44 }
 0x160   : > { %v682_v46 = vpop.permute.xlu0 %681 }
 0x161   : > { %719 = vrot.lane.b32.xlu0 %v703_v43, %s1154_s21  ;;  %725 = vrot.lane.b32.xlu1 %v706_v45, %s1154_s21  ;;  %v704_v48 = vmul.f32 %v1288_v47, %v682_v46 }
 0x164   : > { %v688_v50 = vpop.permute.xlu0 %687 }
 0x165   : > { %v707_v51 = vmul.f32 %v1291_v49, %v688_v50  ;;  %721 = vrot.lane.b32.xlu1 %v704_v48, %s1154_s21 }
 0x167   : > { %727 = vrot.lane.b32.xlu0 %v707_v51, %s1154_s21 }
 0x168   : > { %v690_v54 = vpop.permute.xlu1 %689  ;;  %v692_v55 = vpop.permute.xlu0 %691 }
 0x169   : > { %v708_v56 = vmul.f32 %v1298_v53, %v690_v54  ;;  %v709_v57 = vmul.f32 %v1295_v52, %v692_v55 }
 0x16b   : > { %729 = vrot.lane.b32.xlu1 %v708_v56, %s1154_s21  ;;  %731 = vrot.lane.b32.xlu0 %v709_v57, %s1154_s21 }
 0x16c   : > { %v694_v59 = vpop.permute.xlu1 %693  ;;  %v640_v61 = vpop.permute.xlu0 %639 }
 0x16d   : > { %v710_v60 = vmul.f32 %v1304_v58, %v694_v59  ;;  %v663_v8 = vmul.f32 %v1280_v41, %v640_v61 }
 0x16f   : > { %733 = vrot.lane.b32.xlu1 %v710_v60, %s1154_s21 }
 0x170   : > { %v642_v62 = vpop.permute.xlu1 %641  ;;  %v644_v63 = vpop.permute.xlu0 %643 }
 0x171   : > { %v665_v4 = vmul.f32 %v1276_v36, %v644_v63  ;;  %v664_v14 = vmul.f32 %v1288_v47, %v642_v62 }
 0x174   : > { %v646_v0 = vpop.permute.xlu1 %645  ;;  %v648_v1 = vpop.permute.xlu0 %647 }
 0x175   : > { %v666_v9 = vmul.f32 %v1282_v42, %v646_v0  ;;  %v667_v16 = vmul.f32 %v1291_v49, %v648_v1 }
 0x178   : > { %v650_v2 = vpop.permute.xlu1 %649  ;;  %v652_v3 = vpop.permute.xlu0 %651 }
 0x179   : > { %v668_v20 = vmul.f32 %v1298_v53, %v650_v2  ;;  %v669_v21 = vmul.f32 %v1295_v52, %v652_v3 }
 0x17c   : > { %v654_v6 = vpop.permute.xlu1 %653 }
 0x17d   : > { %v670_v27 = vmul.f32 %v1304_v58, %v654_v6 }
 0x1cf   : > { %v724_v5 = vpop.permute.xlu0 %723 }
 0x1d0   : > { %v745_v7 = vadd.f32 %v724_v5, %v665_v4 }
 0x1d2   : > { %1130 = vtanh.f32 %v745_v7 }
 0x1d3   : > { %v720_v10 = vpop.permute.xlu0 %719  ;;  %v726_v11 = vpop.permute.xlu1 %725 }
 0x1d4   : > { %v743_v12 = vadd.f32 %v720_v10, %v663_v8  ;;  %v746_v13 = vadd.f32 %v726_v11, %v666_v9 }
 0x1d6   : > { %1132 = vtanh.f32 %v743_v12 }
 0x1d7   : > { %1134 = vtanh.f32 %v746_v13  ;;  %v722_v15 = vpop.permute.xlu1 %721 }
 0x1d8   : > { %v744_v17 = vadd.f32 %v722_v15, %v664_v14 }
 0x1d9   : > { %v728_v18 = vpop.permute.xlu0 %727 }
 0x1da   : > { %1136 = vtanh.f32 %v744_v17  ;;  %v747_v19 = vadd.f32 %v728_v18, %v667_v16 }
 0x1dc   : > { %1138 = vtanh.f32 %v747_v19 }
 0x1dd   : > { %v730_v22 = vpop.permute.xlu1 %729  ;;  %v732_v23 = vpop.permute.xlu0 %731 }
 0x1de   : > { %v748_v25 = vadd.f32 %v730_v22, %v668_v20  ;;  %v749_v26 = vadd.f32 %v732_v23, %v669_v21 }
 0x1df   : > { %v1131_v24 = vpop.eup %1130 }
 0x1e0   : > { %771 = vrot.lane.b32.xlu0 %v1131_v24, %s1154_s21  ;;  %1140 = vtanh.f32 %v748_v25 }
 0x1e1   : > { %1142 = vtanh.f32 %v749_v26  ;;  %v734_v28 = vpop.permute.xlu1 %733 }
 0x1e2   : > { %v750_v30 = vadd.f32 %v734_v28, %v670_v27 }
 0x1e3   : > { %v1133_v29 = vpop.eup %1132 }
 0x1e4   : > { %v1135_v31 = vpop.eup %1134  ;;  %767 = vrot.lane.b32.xlu0 %v1133_v29, %s1154_s21  ;;  %1144 = vtanh.f32 %v750_v30 }
 0x1e5   : > { %773 = vrot.lane.b32.xlu1 %v1135_v31, %s1154_s21 }
 0x1e7   : > { %v1137_v32 = vpop.eup %1136 }
 0x1e9   : > { %769 = vrot.lane.b32.xlu1 %v1137_v32, %s1154_s21  ;;  %v1139_v33 = vpop.eup %1138 }
 0x1ea   : > { %775 = vrot.lane.b32.xlu0 %v1139_v33, %s1154_s21 }
 0x1ed   : > { %v1141_v34 = vpop.eup %1140 }
 0x1ee   : > { %v1143_v35 = vpop.eup %1142  ;;  %777 = vrot.lane.b32.xlu1 %v1141_v34, %s1154_s21 }
 0x1ef   : > { %779 = vrot.lane.b32.xlu0 %v1143_v35, %s1154_s21 }
 0x1f1   : > { %v1145_v37 = vpop.eup %1144 }
 0x1f2   : > { %781 = vrot.lane.b32.xlu1 %v1145_v37, %s1154_s21 }
 0x1f3   : > { %847 = vrot.lane.b32.xlu0 %v743_v12, %s1155_s26 }
 0x1f6   : > { %849 = vrot.lane.b32.xlu1 %v744_v17, %s1155_s26 }
 0x1f7   : > { %851 = vrot.lane.b32.xlu0 %v745_v7, %s1155_s26 }
 0x1fa   : > { %853 = vrot.lane.b32.xlu1 %v746_v13, %s1155_s26 }
 0x1fb   : > { %855 = vrot.lane.b32.xlu0 %v747_v19, %s1155_s26 }
 0x1fe   : > { %857 = vrot.lane.b32.xlu1 %v748_v25, %s1155_s26 }
 0x252   : > { %v772_v38 = vpop.permute.xlu0 %771 }
 0x253   : > { %v793_v39 = vmul.f32 %v1276_v36, %v772_v38 }
 0x255   : > { %811 = vrot.lane.b32.xlu0 %v793_v39, %s1156_s27 }
 0x256   : > { %v768_v40 = vpop.permute.xlu0 %767 }
 0x257   : > { %v774_v43 = vpop.permute.xlu1 %773  ;;  %v791_v44 = vmul.f32 %v1280_v41, %v768_v40 }
 0x258   : > { %v794_v45 = vmul.f32 %v1282_v42, %v774_v43 }
 0x259   : > { %807 = vrot.lane.b32.xlu0 %v791_v44, %s1156_s27 }
 0x25a   : > { %813 = vrot.lane.b32.xlu1 %v794_v45, %s1156_s27 }
 0x25b   : > { %v770_v46 = vpop.permute.xlu1 %769 }
 0x25c   : > { %v792_v48 = vmul.f32 %v1288_v47, %v770_v46  ;;  %v776_v50 = vpop.permute.xlu0 %775 }
 0x25d   : > { %v795_v55 = vmul.f32 %v1291_v49, %v776_v50 }
 0x25e   : > { %809 = vrot.lane.b32.xlu1 %v792_v48, %s1156_s27 }
 0x260   : > { %v778_v51 = vpop.permute.xlu1 %777 }
 0x261   : > { %v780_v54 = vpop.permute.xlu0 %779  ;;  %v796_v56 = vmul.f32 %v1298_v53, %v778_v51 }
 0x262   : > { %v797_v36 = vmul.f32 %v1295_v52, %v780_v54 }
 0x264   : > { %819 = vrot.lane.b32.xlu0 %v797_v36, %s1156_s27  ;;  %v782_v41 = vpop.permute.xlu1 %781 }
 0x265   : > { %v798_v42 = vmul.f32 %v1304_v58, %v782_v41  ;;  %v848_v47 = vpop.permute.xlu0 %847 }
 0x266   : > { %871 = vst.msk [vmem:[%s1339_s30] sm:$0xff] %vm385_vm0, %v848_v47 }
 0x267   : > { %821 = vrot.lane.b32.xlu1 %v798_v42, %s1156_s27 }
 0x268   : > { %815 = vrot.lane.b32.xlu0 %v795_v55, %s1156_s27  ;;  %v850_v52 = vpop.permute.xlu1 %849 }
 0x269   : > { %872 = vst.msk [vmem:[%s1339_s30 + $0x8] sm:$0xff] %vm385_vm0, %v850_v52  ;;  %v852_v57 = vpop.permute.xlu0 %851 }
 0x26a   : > { %873 = vst.msk [vmem:[%s1339_s30 + $0x10] sm:$0xff] %vm385_vm0, %v852_v57 }
 0x26b   : > { %817 = vrot.lane.b32.xlu1 %v796_v56, %s1156_s27 }
 0x26c   : > { %859 = vrot.lane.b32.xlu0 %v749_v26, %s1155_s26  ;;  %v854_v58 = vpop.permute.xlu1 %853 }
 0x26d   : > { %874 = vst.msk [vmem:[%s1339_s30 + $0x18] sm:$0xff] %vm385_vm0, %v854_v58  ;;  %v856_v49 = vpop.permute.xlu0 %855 }
 0x26e   : > { %875 = vst.msk [vmem:[%s1339_s30 + $0x20] sm:$0xff] %vm385_vm0, %v856_v49 }
 0x26f   : > { %861 = vrot.lane.b32.xlu1 %v750_v30, %s1155_s26 }
 0x270   : > { %v858_v59 = vpop.permute.xlu1 %857 }
 0x271   : > { %876 = vst.msk [vmem:[%s1339_s30 + $0x28] sm:$0xff] %vm385_vm0, %v858_v59 }
 0x2c7   : > { %v812_v53 = vpop.permute.xlu0 %811 }
 0x2c8   : > { %833 = vst.msk [vmem:[%s332_s10 + $0x10] sm:$0xff] %vm385_vm0, %v812_v53 }
 0x2cb   : > { %v808_v60 = vpop.permute.xlu0 %807 }
 0x2cc   : > { %v814_v61 = vpop.permute.xlu1 %813  ;;  %831 = vst.msk [vmem:[%s332_s10] sm:$0xff] %vm385_vm0, %v808_v60 }
 0x2cd   : > { %834 = vst.msk [vmem:[%s332_s10 + $0x18] sm:$0xff] %vm385_vm0, %v814_v61 }
 0x2d0   : > { %v810_v62 = vpop.permute.xlu1 %809 }
 0x2d1   : > { %832 = vst.msk [vmem:[%s332_s10 + $0x8] sm:$0xff] %vm385_vm0, %v810_v62 }
 0x2d6   : > { %v820_v63 = vpop.permute.xlu0 %819 }
 0x2d7   : > { %837 = vst.msk [vmem:[%s332_s10 + $0x30] sm:$0xff] %vm385_vm0, %v820_v63 }
 0x2d9   : > { %v822_v0 = vpop.permute.xlu1 %821 }
 0x2da   : > { %838 = vst.msk [vmem:[%s332_s10 + $0x38] sm:$0xff] %vm385_vm0, %v822_v0  ;;  %v816_v1 = vpop.permute.xlu0 %815 }
 0x2db   : > { %835 = vst.msk [vmem:[%s332_s10 + $0x20] sm:$0xff] %vm385_vm0, %v816_v1 }
 0x2dd   : > { %v818_v2 = vpop.permute.xlu1 %817 }
 0x2de   : > { %836 = vst.msk [vmem:[%s332_s10 + $0x28] sm:$0xff] %vm385_vm0, %v818_v2  ;;  %v860_v3 = vpop.permute.xlu0 %859 }
 0x2df   : > { %877 = vst.msk [vmem:[%s1339_s30 + $0x30] sm:$0xff] %vm385_vm0, %v860_v3 }
 0x2e1   : > { %v862_v4 = vpop.permute.xlu1 %861 }
 0x2e2   : > { %878 = vst.msk [vmem:[%s1339_s30 + $0x38] sm:$0xff] %vm385_vm0, %v862_v4 }
 0x2e3 PF: > { %s18_s24 = sadd.s32 1, %s1152_s24  }
 0x2e4   : > { %p15_p4 = scmp.ge.s32.totalorder %s18_s24, 4  }
 0x2e6   :  { %17 = sbr.rel (!%p15_p4) target bundleno = 1 (0x1), region = 92 }

</bundles_post_ra>
